<compile_context>
chip_gen: v7x
topology: tpu7x:2x2x1
jax: 0.10.0
libtpu: 0.0.40
codegen_flags: <defaults>
</compile_context>

<pallas_src>
from typing import NamedTuple, Optional

import jax
import jax.numpy as jnp
from jax.experimental import pallas as pl
from jax.experimental.pallas import tpu as pltpu


def _round_up(n, m):
    return ((n + m - 1) // m) * m


def _vmem_capacity_bytes():
    """Physical VMEM per TensorCore; conservative 64 MiB (v7x) fallback."""
    try:
        cap = int(pltpu.get_tpu_info().vmem_capacity_bytes)
        if cap >= (32 << 20):
            return cap
    except Exception:
        pass
    return 64 << 20


# -----------------------------------------------------------------------------
# Kernels
# -----------------------------------------------------------------------------

def _fused_matmul_bias_relu_kernel(x_ref, w_ref, b_ref, o_ref):
    # Single K step: whole contraction in one MXU call, fused bias + relu.
    acc = jnp.dot(x_ref[...], w_ref[...], preferred_element_type=jnp.float32)
    o_ref[...] = jnp.maximum(acc + b_ref[...], 0.0).astype(o_ref.dtype)


def _tiled_matmul_bias_relu_kernel(x_ref, w_ref, b_ref, o_ref, acc_ref):
    # K-tiled fallback (very large K): f32 accumulator resident across axis 2.
    k = pl.program_id(2)

    @pl.when(k == 0)
    def _():
        acc_ref[...] = jnp.zeros_like(acc_ref)

    acc_ref[...] += jnp.dot(
        x_ref[...], w_ref[...], preferred_element_type=jnp.float32
    )

    @pl.when(k == pl.num_programs(2) - 1)
    def _():
        o_ref[...] = jnp.maximum(acc_ref[...] + b_ref[...], 0.0).astype(o_ref.dtype)


# -----------------------------------------------------------------------------
# Parameter preparation (hoisted out of the per-call path)
# -----------------------------------------------------------------------------

class PreparedEncoderParams(NamedTuple):
    weight2d: jax.Array   # (Kp, Fp) compute dtype, L folded into K, zero padded
    bias2d: jax.Array     # (1, Fp)  float32, zero padded
    K: int                # unpadded L * D
    F: int                # unpadded dict_size


def prepare_encoder_params(weight, bias, *, compute_dtype=jnp.bfloat16,
                           k_align=256, f_align=256):
    """Fold L into K, cast to the MXU operand dtype and zero-pad K/F to 256
    multiples.  Do this ONCE per parameter set and reuse across forward calls
    (under jit, keep K/F static)."""
    L, D, F = weight.shape
    K = L * D
    Kp, Fp = _round_up(K, k_align), _round_up(F, f_align)
    w2 = weight.reshape(K, F).astype(compute_dtype)
    if (Kp, Fp) != (K, F):
        w2 = jnp.pad(w2, ((0, Kp - K), (0, Fp - F)))
    b2 = bias.astype(jnp.float32)
    if Fp != F:
        b2 = jnp.pad(b2, (0, Fp - F))
    return PreparedEncoderParams(w2, b2.reshape(1, Fp), K, F)


# -----------------------------------------------------------------------------
# Tile selection
# -----------------------------------------------------------------------------

def _select_tiles(B, Kp, Fp, bpe_compute, bpe_out, vmem_cap):
    """Pick (tm, tn, tk, single_k_step) under a ~70%-of-VMEM budget.

    Streamed HBM traffic scales as 1/tile, so prefer the largest tm, then the
    largest tn, and a single K step (no accumulator scratch) as a tiebreak.
    """
    budget = int(0.70 * vmem_cap)
    big_vmem = vmem_cap >= (96 << 20)                       # v5e / v6e (128 MiB)

    tm_base = (1024, 512, 256, 128, 64, 32, 16) if big_vmem \
        else (512, 256, 128, 64, 32, 16)
    tn_base = (2048, 1024, 512, 256) if big_vmem else (1024, 512, 256)

    tm_cap = _round_up(B, 16)
    tm_cands = sorted({min(t, tm_cap) for t in tm_base}, reverse=True)
    tn_cands = sorted({t for t in tn_base if Fp % t == 0}
                      | ({Fp} if Fp <= tn_base[0] else set()), reverse=True)
    if not tn_cands:
        tn_cands = [256]

    tk_multi = 512 if Kp % 512 == 0 else 256

    def vmem_est(tm, tn, tk, single):
        return (2 * tm * tk * bpe_compute        # x block (double buffered)
                + 2 * tk * tn * bpe_compute      # weight block (double buffered)
                + 2 * tn * 4                     # bias block
                + 2 * tm * tn * bpe_out          # output block (double buffered)
                + (0 if single else tm * tn * 4))  # f32 accumulator scratch

    best = None
    for single, tk in ((True, Kp), (False, tk_multi)):
        for tm in tm_cands:
            for tn in tn_cands:
                if vmem_est(tm, tn, tk, single) <= budget:
                    score = (tm, tn, int(single))
                    if best is None or score > best[0]:
                        best = (score, tm, tn, tk, single)

    if best is None:                             # degenerate, should not happen
        return min(16, tm_cap), 256, min(tk_multi, Kp), False

    _, tm, tn, tk, single = best

    # Megacore (v7x has 2 TensorCores): keep >= 2 parallel output tiles when
    # the feature dim allows it, so both cores get work.
    Mp = _round_up(B, tm)
    if (Mp // tm) * (Fp // tn) == 1 and Fp % 512 == 0:
        tn = Fp // 2

    return tm, tn, tk, single


# -----------------------------------------------------------------------------
# Forward
# -----------------------------------------------------------------------------

def crosscoder_encoder(x, weight, bias=None, *, compute_dtype=jnp.bfloat16,
                       out_dtype=None, weight_buffer_count: Optional[int] = None):
    """relu(einsum('bld,ldf->blf', x, weight).sum(1) + bias) -> (B, F).

    `weight` may be the raw (L, D, F) tensor (with `bias` of shape (F,)), or a
    PreparedEncoderParams from prepare_encoder_params() to skip the per-call
    weight reshape/cast/pad (recommended: prepare once, reuse every step).
    """
    if isinstance(weight, PreparedEncoderParams):
        params = weight
    else:
        if bias is None:
            raise ValueError("bias must be provided with a raw weight tensor")
        params = prepare_encoder_params(weight, bias, compute_dtype=compute_dtype)

    B, L, D = x.shape
    K, F = params.K, params.F
    if L * D != K:
        raise ValueError(f"x dims ({L}x{D}) do not match prepared weight K={K}")
    Kp, Fp = params.weight2d.shape
    compute_dtype = params.weight2d.dtype
    if out_dtype is None:
        out_dtype = x.dtype

    vmem_cap = _vmem_capacity_bytes()
    tm, tn, tk, single = _select_tiles(
        B, Kp, Fp,
        jnp.dtype(compute_dtype).itemsize, jnp.dtype(out_dtype).itemsize,
        vmem_cap)
    Mp = _round_up(B, tm)

    # x: fold L into K (contiguous reshape), cast to the MXU operand dtype,
    # zero-pad only when needed (padded K contributes nothing to the matmul).
    x2 = x.reshape(B, K).astype(compute_dtype)
    if (Mp, Kp) != (B, K):
        x2 = jnp.pad(x2, ((0, Mp - B), (0, Kp - K)))

    est = (2 * tm * tk * jnp.dtype(compute_dtype).itemsize
           + 2 * tk * tn * jnp.dtype(compute_dtype).itemsize
           + 2 * tn * 4
           + 2 * tm * tn * jnp.dtype(out_dtype).itemsize
           + (0 if single else tm * tn * 4))
    # Scoped VMEM: enough headroom over the block estimate, never more than
    # ~92% of this chip's physical VMEM (v7x is only 64 MiB per TensorCore).
    vmem_limit = int(min(max(int(1.3 * est) + (8 << 20), 32 << 20),
                         int(0.92 * vmem_cap)))

    w_spec_kwargs = {}
    if weight_buffer_count is not None:
        # e.g. weight_buffer_count=3 on v5e if the weight DMA shows up exposed.
        w_spec_kwargs["pipeline_mode"] = pl.Buffered(weight_buffer_count)

    if single:
        # Whole K in one step; M innermost so the (Kp, tn) weight block stays
        # resident across the inner sweep (weight read from HBM exactly once).
        grid = (Fp // tn, Mp // tm)
        out = pl.pallas_call(
            _fused_matmul_bias_relu_kernel,
            out_shape=jax.ShapeDtypeStruct((Mp, Fp), out_dtype),
            grid_spec=pltpu.PrefetchScalarGridSpec(
                num_scalar_prefetch=0,
                grid=grid,
                in_specs=[
                    pl.BlockSpec((tm, Kp), lambda j, i: (i, 0)),                  # x
                    pl.BlockSpec((Kp, tn), lambda j, i: (0, j), **w_spec_kwargs),  # w
                    pl.BlockSpec((1, tn), lambda j, i: (0, j)),                   # bias
                ],
                out_specs=pl.BlockSpec((tm, tn), lambda j, i: (i, j)),
            ),
            compiler_params=pltpu.CompilerParams(
                dimension_semantics=("parallel", "parallel"),
                vmem_limit_bytes=vmem_limit,
            ),
        )(x2, params.weight2d, params.bias2d)
    else:
        # Large-K fallback: reduction axis last, f32 accumulator scratch.
        grid = (Fp // tn, Mp // tm, Kp // tk)
        out = pl.pallas_call(
            _tiled_matmul_bias_relu_kernel,
            out_shape=jax.ShapeDtypeStruct((Mp, Fp), out_dtype),
            grid_spec=pltpu.PrefetchScalarGridSpec(
                num_scalar_prefetch=0,
                grid=grid,
                in_specs=[
                    pl.BlockSpec((tm, tk), lambda j, i, k: (i, k)),
                    pl.BlockSpec((tk, tn), lambda j, i, k: (k, j), **w_spec_kwargs),
                    pl.BlockSpec((1, tn), lambda j, i, k: (0, j)),
                ],
                out_specs=pl.BlockSpec((tm, tn), lambda j, i, k: (i, j)),
                scratch_shapes=[pltpu.VMEM((tm, tn), jnp.float32)],
            ),
            compiler_params=pltpu.CompilerParams(
                dimension_semantics=("parallel", "parallel", "arbitrary"),
                vmem_limit_bytes=vmem_limit,
            ),
        )(x2, params.weight2d, params.bias2d)

    if (Mp, Fp) != (B, F):
        out = out[:B, :F]
    return out


# -----------------------------------------------------------------------------
# Init + reference + self-test
# -----------------------------------------------------------------------------

def make_params(key, num_layers, activation_dim, dict_size):
    """Kaiming-uniform-like init (torch fan_in rule for an (L, D, F) tensor:
    fan_in = D * F, bound = sqrt(6 / fan_in))."""
    fan_in = activation_dim * dict_size
    bound = jnp.sqrt(6.0 / fan_in)
    weight = jax.random.uniform(
        key, (num_layers, activation_dim, dict_size),
        dtype=jnp.float32, minval=-bound, maxval=bound,
    )
    bias = jnp.zeros((dict_size,), dtype=jnp.float32)
    return weight, bias


def _reference(x, weight, bias, compute_dtype=jnp.bfloat16):
    # Same operand precision as the kernel (bf16 operands, f32 accumulation).
    xq = x.astype(compute_dtype).astype(jnp.float32)
    wq = weight.astype(compute_dtype).astype(jnp.float32)
    f = jnp.einsum("bld,ldf->blf", xq, wq)
    return jax.nn.relu(f.sum(axis=1) + bias)


if __name__ == "__main__":
    key = jax.random.PRNGKey(0)

    # Case 1: small shapes consistent with the module, prepared-params path.
    B, L, D, F = 8, 3, 32, 128
    kx, kw, kb = jax.random.split(key, 3)
    x = jax.random.normal(kx, (B, L, D), dtype=jnp.float32)
    weight, bias = make_params(kw, L, D, F)
    bias = bias + 0.01 * jax.random.normal(kb, (F,), dtype=jnp.float32)

    params = prepare_encoder_params(weight, bias)          # hoisted weight prep
    out = jax.block_until_ready(crosscoder_encoder(x, params))
    ref = _reference(x, weight, bias)
    assert out.shape == (B, F)
    assert jnp.allclose(out, ref, atol=1e-3, rtol=1e-3), "mismatch vs reference"

    # Case 2: non-tile-multiple shapes, raw-weight path (exercises pad/slice).
    B2, L2, D2, F2 = 20, 2, 48, 200
    kx2, kw2 = jax.random.split(jax.random.PRNGKey(1))
    x2 = jax.random.normal(kx2, (B2, L2, D2), dtype=jnp.float32)
    w2, b2 = make_params(kw2, L2, D2, F2)

    out2 = jax.block_until_ready(crosscoder_encoder(x2, w2, b2))
    ref2 = _reference(x2, w2, b2)
    assert out2.shape == (B2, F2)
    assert jnp.allclose(out2, ref2, atol=1e-3, rtol=1e-3), \
        "mismatch vs reference (padded case)"

    # TODO(synk): `return_no_sum=True` (per-layer relu(f + bias)) needs the
    # unfolded per-layer einsum and is not covered by this summed-path kernel;
    # `select_features` / `encoder_layers` subsetting are cheap slices applied
    # to weight/bias/x before prepare_encoder_params().
    print("KERNEL_OK")
</pallas_src>

<mosaic_0001>
module attributes {stable_mosaic.version = 11 : i64} {
  func.func @_fused_matmul_bias_relu_kernel(%arg0: i32, %arg1: i32, %arg2: memref<16x256xbf16, #tpu.memory_space<vmem>>, %arg3: memref<256x256xbf16, #tpu.memory_space<vmem>>, %arg4: memref<1x256xf32, #tpu.memory_space<vmem>>, %arg5: memref<16x256xf32, #tpu.memory_space<vmem>>) attributes {dimension_semantics = [#tpu.dimension_semantics<parallel>, #tpu.dimension_semantics<parallel>], iteration_bounds = array<i64: 1, 1>, scalar_prefetch = 0 : i64, scratch_operands = 0 : i64, tpu.core_type = #tpu.core_type<tc>, window_params = [{transform_indices = @transform_0, window_bounds = array<i64: 16, 256>}, {transform_indices = @transform_1, window_bounds = array<i64: 256, 256>}, {transform_indices = @transform_2, window_bounds = array<i64: 1, 256>}, {transform_indices = @transform_3, window_bounds = array<i64: 16, 256>}]} {
    %c0 = arith.constant 0 : index
    %c0_0 = arith.constant 0 : index
    %0 = vector.load %arg2[%c0, %c0_0] : memref<16x256xbf16, #tpu.memory_space<vmem>>, vector<16x256xbf16>
    %c0_1 = arith.constant 0 : index
    %c0_2 = arith.constant 0 : index
    %1 = vector.load %arg3[%c0_1, %c0_2] : memref<256x256xbf16, #tpu.memory_space<vmem>>, vector<256x256xbf16>
    %cst = arith.constant dense<0.000000e+00> : vector<16x256xf32>
    %2 = tpu.matmul %0, %1, %cst {dimension_numbers = #tpu.dot_dimension_numbers<[1], [0], [0], [1], [0, 0, 1, 1], [], []>} : vector<16x256xbf16>, vector<256x256xbf16>, vector<16x256xf32> -> vector<16x256xf32>
    %c0_3 = arith.constant 0 : index
    %c0_4 = arith.constant 0 : index
    %3 = vector.load %arg4[%c0_3, %c0_4] : memref<1x256xf32, #tpu.memory_space<vmem>>, vector<1x256xf32>
    %4 = vector.broadcast %3 : vector<1x256xf32> to vector<16x256xf32>
    %5 = arith.addf %2, %4 : vector<16x256xf32>
    %cst_5 = arith.constant 0.000000e+00 : f32
    %6 = vector.broadcast %cst_5 : f32 to vector<16x256xf32>
    %7 = arith.maximumf %5, %6 : vector<16x256xf32>
    %c0_6 = arith.constant 0 : index
    %c0_7 = arith.constant 0 : index
    %8 = vector.load %arg5[%c0_6, %c0_7] : memref<16x256xf32, #tpu.memory_space<vmem>>, vector<16x256xf32>
    tpu.vector_store %arg5[%c0_6, %c0_7], %7 {strides = array<i32>} : memref<16x256xf32, #tpu.memory_space<vmem>>, vector<16x256xf32>,
    return
  }
  func.func @transform_0(%arg0: i32, %arg1: i32) -> (i32, i32) {
    %c0_i32 = arith.constant 0 : i32
    %c0_i32_0 = arith.constant 0 : i32
    return %arg1, %c0_i32 : i32, i32
  }
  func.func @transform_1(%arg0: i32, %arg1: i32) -> (i32, i32) {
    %c0_i32 = arith.constant 0 : i32
    %c0_i32_0 = arith.constant 0 : i32
    return %c0_i32, %arg0 : i32, i32
  }
  func.func @transform_2(%arg0: i32, %arg1: i32) -> (i32, i32) {
    %c0_i32 = arith.constant 0 : i32
    %c0_i32_0 = arith.constant 0 : i32
    return %c0_i32, %arg0 : i32, i32
  }
  func.func @transform_3(%arg0: i32, %arg1: i32) -> (i32, i32) {
    %c0_i32 = arith.constant 0 : i32
    return %arg1, %arg0 : i32, i32
  }
}

</mosaic_0001>

<bundles_post_ra>
// kernel: tpu_custom_call.1
= control target key start
LH: loop header
LB: loop body
LE: loop exit
PB: predicated region body
PF: predicated region fallthrough
CT: control target
= control target key end

     0   :  { %8 = vsyncpa [#allocation3], 0  ;;  %s558_s0 = inlined_call_operand.hbm [shape: bf16[16,256], index: 0, kind: input, shape index: {}]   ;;  %s559_s1 = inlined_call_operand.hbm [shape: bf16[256,256], index: 1, kind: input, shape index: {}]   ;;  %s560_s2 = inlined_call_operand.vmem [shape: f32[1,256], index: 2, kind: input, shape index: {}]   ;;  %s561_s3 = inlined_call_operand.hbm [shape: f32[16,256], index: 3, kind: output, shape index: {}]  }
   0x1   :  { %9 = vsyncpa [#allocation6], 0 }
   0x2   :  { %10 = vsyncpa [#allocation4], 0  ;;  %s492_s12 = smov [#allocation2]   ;;  %s420_s16 = scalar_lea.hbm %s558_s0, 256 }
   0x3   :  { %s16_s13 = sshll.u32 %s492_s12, 4  ;;  %p421_p0 = scmp.ne.s32.totalorder %s558_s0, %s420_s16  ;;  %s17_s13 = int_to_ptr.vmem [resolvable:$true] %s16_s13 }
   0x4   :  { %p424_p1 = scmp.lt.u32.totalorder %s420_s16, %s558_s0 }
   0x6   :  { %p426_p2 = pnand %p424_p1, %p421_p0 }
   0x8   :  { %429 = shalt.err (!%p426_p2)
}
   0x9   :  { %s430_s21 = scalar_lea.vmem %s17_s13, 256  ;;  %p435_p4 = scmp.lt.s32.totalorder %s17_s13, %s17_s13 }
   0xa   :  { %p431_p3 = scmp.ne.s32.totalorder %s17_s13, %s430_s21  ;;  %p436_p5 = scmp.lt.s32.totalorder %s430_s21, %s430_s21 }
   0xc   :  { %p437_p6 = por %p436_p5, %p435_p4 }
   0xe   :  { %p438_p7 = pnand %p437_p6, %p431_p3 }
  0x10   :  { %441 = shalt.err (!%p438_p7)
}
  0x11   :  { %s493_s22 = smov 128   ;;  %s494_s23 = smov 8  }
  0x12   :  { %22 = dma.hbm_to_vmem [thread:$0]  %s558_s0, 256, %s17_s13, [#allocation3], %s493_s22, %s493_s22, %s494_s23  }
  0x13   :  { %s495_s26 = smov [#allocation5]   ;;  %s442_s30 = scalar_lea.hbm %s559_s1, 4096 }
  0x14   :  { %s28_s27 = sshll.u32 %s495_s26, 4  ;;  %p443_p8 = scmp.ne.s32.totalorder %s559_s1, %s442_s30  ;;  %s29_s27 = int_to_ptr.vmem [resolvable:$true] %s28_s27 }
  0x15   :  { %p446_p9 = scmp.lt.u32.totalorder %s442_s30, %s559_s1 }
  0x17   :  { %p448_p10 = pnand %p446_p9, %p443_p8 }
  0x19   :  { %451 = shalt.err (!%p448_p10)
}
  0x1a   :  { %s452_s8 = scalar_lea.vmem %s29_s27, 4096  ;;  %p457_p12 = scmp.lt.s32.totalorder %s29_s27, %s29_s27 }
  0x1b   :  { %p453_p11 = scmp.ne.s32.totalorder %s29_s27, %s452_s8  ;;  %p458_p13 = scmp.lt.s32.totalorder %s452_s8, %s452_s8 }
  0x1d   :  { %p459_p0 = por %p458_p13, %p457_p12 }
  0x1f   :  { %p460_p1 = pnand %p459_p0, %p453_p11 }
  0x21   :  { %463 = shalt.err (!%p460_p1)
}
  0x22   :  { %34 = dma.hbm_to_vmem [thread:$0]  %s559_s1, 4096, %s29_s27, [#allocation6], %s493_s22, %s493_s22, %s494_s23  }
  0x23   :  { %486 = dma.done.wait [#allocation3], 256  }
  0x24   :  { %487 = vsyncadd [#allocation3], 4294967040 }
  0x25   :  { %488 = dma.done.wait [#allocation6], 4096  }
  0x26   :  { %489 = vsyncadd [#allocation6], 4294963200  ;;  %v369_v0 = vld [vmem:[#allocation5 + $0x4] ss:$8 sps:$4 sm:$0xff]   ;;  %v371_v1 = vld [vmem:[#allocation5] ss:$8 sps:$4 sm:$0xff]   ;;  %v79_v34 = vlaneseq }
  0x27   :  { %259 = vmatprep.subr.bf16.mxu0 %v369_v0  ;;  %v372_v2 = vld [vmem:[#allocation5 + $0x14] ss:$8 sps:$4 sm:$0xff]   ;;  %v374_v3 = vld [vmem:[#allocation5 + $0x10] ss:$8 sps:$4 sm:$0xff]   ;;  %v375_v4 = vld [vmem:[#allocation5 + $0x24] ss:$8 sps:$4 sm:$0xff]  }
  0x28   :  { %260 = vmatpush1.bf16.msra.mxu0 %v371_v1  ;;  %v377_v5 = vld [vmem:[#allocation5 + $0x20] ss:$8 sps:$4 sm:$0xff]   ;;  %v378_v6 = vld [vmem:[#allocation5 + $0x34] ss:$8 sps:$4 sm:$0xff]   ;;  %v380_v7 = vld [vmem:[#allocation5 + $0x30] ss:$8 sps:$4 sm:$0xff]  }
  0x29   :  { %261 = vmatprep.subr.bf16.mxu0 %v372_v2  ;;  %v381_v8 = vld [vmem:[#allocation5 + $0x44] ss:$8 sps:$4 sm:$0xff]   ;;  %v383_v9 = vld [vmem:[#allocation5 + $0x40] ss:$8 sps:$4 sm:$0xff]   ;;  %v384_v10 = vld [vmem:[#allocation5 + $0x54] ss:$8 sps:$4 sm:$0xff]  }
  0x2a   :  { %v386_v11 = vld [vmem:[#allocation5 + $0x50] ss:$8 sps:$4 sm:$0xff]   ;;  %v387_v12 = vld [vmem:[#allocation5 + $0x64] ss:$8 sps:$4 sm:$0xff]   ;;  %v419_v13 = vld [vmem:[#allocation2 + $0x4] ss:$8 sps:$4 sm:$0xff]  }
  0x2b   :  { %v389_v14 = vld [vmem:[#allocation5 + $0x60] ss:$8 sps:$4 sm:$0xff]   ;;  %v390_v15 = vld [vmem:[#allocation5 + $0x74] ss:$8 sps:$4 sm:$0xff]   ;;  %291 = vmatprep.mubr.bf16.mxu0 %v419_v13  ;;  %v392_v16 = vld [vmem:[#allocation5 + $0x70] ss:$8 sps:$4 sm:$0xff]  }
  0x2c   :  { %262 = vmatpush1.bf16.msra.mxu0 %v374_v3  ;;  %v393_v17 = vld [vmem:[#allocation5 + $0x84] ss:$8 sps:$4 sm:$0xff]   ;;  %v395_v18 = vld [vmem:[#allocation5 + $0x80] ss:$8 sps:$4 sm:$0xff]   ;;  %v396_v19 = vld [vmem:[#allocation5 + $0x94] ss:$8 sps:$4 sm:$0xff]  }
  0x2d   :  { %263 = vmatprep.subr.bf16.mxu0 %v375_v4  ;;  %v398_v20 = vld [vmem:[#allocation5 + $0x90] ss:$8 sps:$4 sm:$0xff]   ;;  %v399_v21 = vld [vmem:[#allocation5 + $0xa4] ss:$8 sps:$4 sm:$0xff]   ;;  %v401_v22 = vld [vmem:[#allocation5 + $0xa0] ss:$8 sps:$4 sm:$0xff]  }
  0x2e   :  { %v402_v23 = vld [vmem:[#allocation5 + $0xb4] ss:$8 sps:$4 sm:$0xff]   ;;  %v404_v24 = vld [vmem:[#allocation5 + $0xb0] ss:$8 sps:$4 sm:$0xff]   ;;  %v405_v25 = vld [vmem:[#allocation5 + $0xc4] ss:$8 sps:$4 sm:$0xff]  }
  0x2f   :  { %v407_v26 = vld [vmem:[#allocation5 + $0xc0] ss:$8 sps:$4 sm:$0xff]   ;;  %v408_v27 = vld [vmem:[#allocation5 + $0xd4] ss:$8 sps:$4 sm:$0xff]   ;;  %v410_v28 = vld [vmem:[#allocation5 + $0xd0] ss:$8 sps:$4 sm:$0xff]  }
  0x30   :  { %264 = vmatpush1.bf16.msra.mxu0 %v377_v5  ;;  %v411_v29 = vld [vmem:[#allocation5 + $0xe4] ss:$8 sps:$4 sm:$0xff]   ;;  %v413_v30 = vld [vmem:[#allocation5 + $0xe0] ss:$8 sps:$4 sm:$0xff]   ;;  %v414_v31 = vld [vmem:[#allocation5 + $0xf4] ss:$8 sps:$4 sm:$0xff]  }
  0x31   :  { %265 = vmatprep.subr.bf16.mxu0 %v378_v6  ;;  %v416_v32 = vld [vmem:[#allocation5 + $0xf0] ss:$8 sps:$4 sm:$0xff]   ;;  %v80_v35 = vshrl.u32 %v79_v34, 7  ;;  %s496_s11 = smov [#allocation7]  }
  0x32   :  { %v417_v33 = vld [vmem:[#allocation2] ss:$8 sps:$4 sm:$0xff]   ;;  %s315_s12 = sshll.u32 %s496_s11, 4  ;;  %s316_s12 = int_to_ptr.vmem [resolvable:$true] %s315_s12 }
  0x33   :  { %v81_v36 = vsub.s32 0, %v80_v35  ;;  %v77_v37 = vld [vmem:[%s560_s2] sm:$0x3]  ;;  %v85_v38 = vsub.s32 1, %v80_v35  ;;  %s464_s2 = scalar_lea.vmem %s316_s12, 512  ;;  %p469_p3 = scmp.lt.s32.totalorder %s316_s12, %s316_s12 }
  0x34   :  { %266 = vmatpush1.bf16.msra.mxu0 %v380_v7  ;;  %p465_p2 = scmp.ne.s32.totalorder %s316_s12, %s464_s2  ;;  %p470_p4 = scmp.lt.s32.totalorder %s464_s2, %s464_s2 }
  0x35   :  { %267 = vmatprep.subr.bf16.mxu0 %v381_v8  ;;  %v82_v39 = vrot.slane %v77_v37, %v81_v36  ;;  %v86_v40 = vrot.slane %v77_v37, %v85_v38 }
  0x36   :  { %p471_p5 = por %p470_p4, %p469_p3 }
  0x38   :  { %268 = vmatpush1.bf16.msra.mxu0 %v383_v9  ;;  %p472_p6 = pnand %p471_p5, %p465_p2 }
  0x39   :  { %269 = vmatprep.subr.bf16.mxu0 %v384_v10 }
  0x3c   :  { %270 = vmatpush1.bf16.msra.mxu0 %v386_v11 }
  0x3d   :  { %271 = vmatprep.subr.bf16.mxu0 %v387_v12 }
  0x40   :  { %272 = vmatpush1.bf16.msra.mxu0 %v389_v14 }
  0x41   :  { %273 = vmatprep.subr.bf16.mxu0 %v390_v15 }
  0x44   :  { %274 = vmatpush1.bf16.msra.mxu0 %v392_v16 }
  0x45   :  { %275 = vmatprep.subr.bf16.mxu0 %v393_v17 }
  0x48   :  { %276 = vmatpush1.bf16.msra.mxu0 %v395_v18 }
  0x49   :  { %277 = vmatprep.subr.bf16.mxu0 %v396_v19 }
  0x4c   :  { %278 = vmatpush1.bf16.msra.mxu0 %v398_v20 }
  0x4d   :  { %279 = vmatprep.subr.bf16.mxu0 %v399_v21 }
  0x50   :  { %280 = vmatpush1.bf16.msra.mxu0 %v401_v22 }
  0x51   :  { %281 = vmatprep.subr.bf16.mxu0 %v402_v23 }
  0x54   :  { %282 = vmatpush1.bf16.msra.mxu0 %v404_v24 }
  0x55   :  { %283 = vmatprep.subr.bf16.mxu0 %v405_v25 }
  0x58   :  { %284 = vmatpush1.bf16.msra.mxu0 %v407_v26 }
  0x59   :  { %285 = vmatprep.subr.bf16.mxu0 %v408_v27 }
  0x5c   :  { %286 = vmatpush1.bf16.msra.mxu0 %v410_v28 }
  0x5d   :  { %287 = vmatprep.subr.bf16.mxu0 %v411_v29 }
  0x60   :  { %288 = vmatpush1.bf16.msra.mxu0 %v413_v30 }
  0x61   :  { %289 = vmatprep.subr.bf16.mxu0 %v414_v31 }
  0x64   :  { %290 = vmatpush1.bf16.msra.mxu0 %v416_v32 }
  0x67   :  { %292 = vmatmul.mubr.bf16.vlgmr.msra.gmra.mrb[0].mxu0 %v417_v33 }
 0x13a   :  { %v293_v41 = vpop.f32.mrb[0].mxu0 }
 0x13b   :  { %v294_v42 = vadd.f32 %v293_v41, %v82_v39  ;;  %v295_v43 = vpop.f32.mrb[1].mxu0 }
 0x13c   :  { %v296_v44 = vadd.f32 %v295_v43, %v86_v40  ;;  %v297_v45 = vpop.f32.mrb[2].mxu0 }
 0x13d   :  { %v302_v46 = vmax.f32 %v294_v42, 0.0  ;;  %v298_v47 = vadd.f32 %v297_v45, %v82_v39  ;;  %v299_v48 = vpop.f32.mrb[3].mxu0 }
 0x13e   :  { %v303_v49 = vmax.f32 %v296_v44, 0.0  ;;  %v300_v50 = vadd.f32 %v299_v48, %v86_v40 }
 0x13f   :  { %306 = vst [vmem:[#allocation7] sm:$0xff] %v302_v46  ;;  %v304_v51 = vmax.f32 %v298_v47, 0.0 }
 0x140   :  { %307 = vst [vmem:[#allocation7 + $0x8] sm:$0xff] %v303_v49  ;;  %v305_v52 = vmax.f32 %v300_v50, 0.0 }
 0x141   :  { %308 = vst [vmem:[#allocation7 + $0x10] sm:$0xff] %v304_v51 }
 0x142   :  { %309 = vst [vmem:[#allocation7 + $0x18] sm:$0xff] %v305_v52 }
 0x143   :  { %475 = shalt.err (!%p472_p6)
}
 0x144   :  { %s476_s15 = scalar_lea.hbm %s561_s3, 512 }
 0x145   :  { %p477_p7 = scmp.ne.s32.totalorder %s561_s3, %s476_s15  ;;  %p480_p8 = scmp.lt.u32.totalorder %s476_s15, %s561_s3 }
 0x147   :  { %p482_p9 = pnand %p480_p8, %p477_p7 }
 0x149   :  { %485 = shalt.err (!%p482_p9)
}
 0x14a   :  { %s497_s20 = smov 256   ;;  %s498_s21 = smov 16  }
 0x14b   :  { %321 = dma.vmem_to_hbm [thread:$0]  %s316_s12, 512, %s561_s3, [#allocation4], %s497_s20, %s497_s20, %s498_s21  }
 0x14c   :  { %490 = dma.done.wait [#allocation4], 512  }
 0x14d   :  { %491 = vsyncadd [#allocation4], 4294966784 }
 0x14e   :  { %325 = vsyncpa [#allocation3], 1 }
 0x14f   :  { %326 = vsyncpa [#allocation6], 1 }
 0x150   :  { %327 = vsyncpa [#allocation4], 1 }

</bundles_post_ra>
